<compile_context>
chip_gen: v7x
topology: tpu7x:2x2x1
jax: 0.10.0
libtpu: 0.0.40
codegen_flags: <defaults>
</compile_context>

<pallas_src>
import functools

import jax
import jax.numpy as jnp
from jax.experimental import pallas as pl
from jax.experimental.pallas import tpu as pltpu


def _vmem_limit_bytes():
    """Generation-aware VMEM limit: ~75% of physical VMEM, capped at 96 MiB."""
    try:
        phys = int(pltpu.get_tpu_info().vmem_capacity_bytes)
    except Exception:  # non-TPU backend (e.g. CPU interpret mode) or query unsupported
        phys = 64 << 20
    return min(max(phys - (phys >> 2), 32 << 20), 96 << 20)


def _choose_batch_tile(B, S, F, vmem_limit_bytes):
    """Pick the batch tile TB (rows per grid step).

    Budget per batch element: 2x double-buffered M output block + 2x (possible) uniform
    input block + ~4 live f32 elementwise temporaries, each (1, S*F) f32, sized against
    half of vmem_limit_bytes.  Prefers >= 4 grid steps (2 per TensorCore on v7x) when the
    batch allows it, and keeps proper sub-tiles sublane-aligned (multiple of 8) divisors
    of B.
    """
    lanes = S * F
    per_elem = 8 * lanes * 4
    tb = int(max(1, (vmem_limit_bytes // 2) // per_elem))
    tb = min(tb, B)
    for steps in (4, 2):  # keep every TensorCore pipelined when batch allows
        if tb > B // steps >= 8:
            tb = B // steps
            break
    if B >= 8:
        tb = max(8, (tb // 8) * 8)          # sublane-aligned proper sub-tile
        while tb > 8 and B % tb:
            tb -= 8
        if B % tb:
            tb = B                          # B not a multiple of 8: one full-dim step
    else:
        tb = B
    return tb


def _selector_kernel(seed_ref, logits_ref, seg_ref, segt_ref, tilem_ref, x_ref, *rest,
                     inv_temperature, in_kernel_rng, use_runtime_max):
    """One batch tile per grid step, everything in the collapsed (TB, S*F) lane layout.

    seed_ref:   SMEM (1,) int32     base PRNG seed (scalar-prefetched; unused on fallback)
    logits_ref: (1, S*F) f32        _logits/(gamma*T) minus per-row max, flattened; resident
    seg_ref:    (S*F, S) f32        constant block-diagonal segment-sum matrix
    segt_ref:   (S, S*F) f32        its transpose (per-segment broadcast)
    tilem_ref:  (F, S*F) f32        constant 0/1 matrix tiling x over the S segments
    x_ref:      (TB, F) f32         input features for this batch tile
    [u_ref]:    (TB, S*F) f32       host-generated uniforms (only when not in_kernel_rng)
    out_ref:    (TB, S) f32         selected features
    m_ref:      (TB, S*F) f32       Concrete selection matrices (reshaped to (B,S,F) outside)
    """
    if in_kernel_rng:
        out_ref, m_ref = rest
    else:
        u_ref, out_ref, m_ref = rest

    TB = x_ref.shape[0]
    lanes = logits_ref.shape[1]                     # S * F
    eps = float(jnp.finfo(jnp.float32).eps)

    if in_kernel_rng:
        # Distinct stream per (seed, batch tile); program_id is a separate seed word so
        # consecutive base seeds never alias streams across tiles.
        pltpu.prng_seed(seed_ref[0], pl.program_id(0))
        raw = pltpu.bitcast(pltpu.prng_random_bits((TB, lanes)), jnp.uint32)
        # top 23 bits -> mantissa of a float in [1, 2); subtract 1 -> uniform in [0, 1)
        fbits = (raw >> jnp.uint32(9)) | jnp.uint32(0x3F800000)
        u = pltpu.bitcast(fbits, jnp.float32) - 1.0
    else:
        u = u_ref[...]
    u = jnp.clip(u, eps, 1.0 - eps)                 # clamp_probs
    gumbels = -jnp.log(-jnp.log(u))                 # (TB, S*F), lane-dense EUP work

    # exponent = logits/(gamma*T) - rowmax(logits/(gamma*T)) + gumbels/T
    # (softmax-invariant shift pre-folded in the wrapper; gumbels <= ~15.9 so no overflow)
    scores = logits_ref[...] + gumbels * inv_temperature      # (1,S*F) bcast + (TB,S*F)

    if use_runtime_max:
        # Cold path (tiny temperature only): explicit per-segment max via a 3-D detour.
        S = seg_ref.shape[1]
        F = x_ref.shape[1]
        s3 = scores.reshape(TB, S, F)
        scores = (s3 - jnp.max(s3, axis=-1, keepdims=True)).reshape(TB, lanes)

    e = jnp.exp(scores)                             # (TB, S*F), full-lane EUP

    # Per-(b, s) segment reductions / broadcasts as tiny MXU matmuls vs. constant 0/1
    # matrices (MXU is otherwise idle; avoids any (8,128)-crossing reshape/relayout).
    denom = jnp.dot(e, seg_ref[...], preferred_element_type=jnp.float32)          # (TB, S)
    x_tiled = jnp.dot(x_ref[...], tilem_ref[...], preferred_element_type=jnp.float32)  # (TB, S*F)
    num = jnp.dot(e * x_tiled, seg_ref[...], preferred_element_type=jnp.float32)  # (TB, S)

    inv = 1.0 / denom                               # exact divide: rows of M sum to 1
    out_ref[...] = num * inv                        # out[b,s] = (sum_f e*x) / denom
    inv_tiled = jnp.dot(inv, segt_ref[...], preferred_element_type=jnp.float32)   # (TB, S*F)
    m_ref[...] = e * inv_tiled                      # normalized Concrete sample


def concrete_selector_forward(x, logits_param, seed, *, temperature=10.0, gamma=1.0 / 3.0,
                              in_kernel_rng=None):
    """JAX/Pallas equivalent of ConcreteSelector.forward.

    x:            (B, F) float32
    logits_param: (S, F) float32   (the nn.Parameter `_logits`)
    seed:         int              PRNG seed for the Gumbel noise
    returns:      (out (B, S), M (B, S, F))
    """
    x = jnp.asarray(x, jnp.float32)
    logits_param = jnp.asarray(logits_param, jnp.float32)
    B, F = x.shape
    S = logits_param.shape[0]
    lanes = S * F

    if in_kernel_rng is None:
        # In-kernel PRNG primitives only lower through Mosaic; fall back to host-side
        # uniforms on any non-TPU backend (e.g. CPU interpret mode).
        in_kernel_rng = jax.default_backend() == "tpu"

    vmem_limit = _vmem_limit_bytes()
    TB = _choose_batch_tile(B, S, F, vmem_limit)
    assert B % TB == 0
    grid = (B // TB,)

    # Pre-fold both divisions and the softmax-invariant row shift into the tiny,
    # grid-invariant logits.
    inv_temperature = 1.0 / float(temperature)
    logits_scaled = logits_param * (1.0 / (float(gamma) * float(temperature)))
    logits_norm = logits_scaled - jnp.max(logits_scaled, axis=-1, keepdims=True)
    logits_row = logits_norm.reshape(1, lanes)
    use_runtime_max = float(temperature) < 0.5      # exp(gumbels/T) could overflow otherwise

    # Constant 0/1 matrices driving the per-(b,s) segment sums / broadcasts on the MXU.
    seg_ids = jnp.arange(lanes, dtype=jnp.int32) // F
    feat_ids = jnp.arange(lanes, dtype=jnp.int32) % F
    seg = (seg_ids[:, None] == jnp.arange(S, dtype=jnp.int32)[None, :]).astype(jnp.float32)      # (S*F, S)
    seg_t = jnp.transpose(seg)                                                                    # (S, S*F)
    tile_mat = (jnp.arange(F, dtype=jnp.int32)[:, None] == feat_ids[None, :]).astype(jnp.float32)  # (F, S*F)

    seed_arr = jnp.asarray([seed], dtype=jnp.int32)

    inputs = [logits_row, seg, seg_t, tile_mat, x]
    in_specs = [
        pl.BlockSpec((1, lanes), lambda b, s: (0, 0)),      # pre-folded logits (resident)
        pl.BlockSpec((lanes, S), lambda b, s: (0, 0)),      # segment-sum matrix
        pl.BlockSpec((S, lanes), lambda b, s: (0, 0)),      # segment-broadcast matrix
        pl.BlockSpec((F, lanes), lambda b, s: (0, 0)),      # x tiling matrix
        pl.BlockSpec((TB, F), lambda b, s: (b, 0)),         # x batch tile
    ]
    if not in_kernel_rng:
        u = jax.random.uniform(jax.random.PRNGKey(int(seed)), (B, lanes), dtype=jnp.float32)
        inputs.append(u)
        in_specs.append(pl.BlockSpec((TB, lanes), lambda b, s: (b, 0)))

    out, m_flat = pl.pallas_call(
        functools.partial(
            _selector_kernel,
            inv_temperature=inv_temperature,
            in_kernel_rng=in_kernel_rng,
            use_runtime_max=use_runtime_max,
        ),
        out_shape=(
            jax.ShapeDtypeStruct((B, S), jnp.float32),       # out
            jax.ShapeDtypeStruct((B, lanes), jnp.float32),   # M, lane-dense; reshaped below
        ),
        grid_spec=pltpu.PrefetchScalarGridSpec(
            num_scalar_prefetch=1,                           # seed -> SMEM
            grid=grid,
            in_specs=in_specs,
            out_specs=(
                pl.BlockSpec((TB, S), lambda b, s: (b, 0)),
                pl.BlockSpec((TB, lanes), lambda b, s: (b, 0)),
            ),
        ),
        compiler_params=pltpu.CompilerParams(
            dimension_semantics=("parallel",),               # batch tiles are independent
            vmem_limit_bytes=vmem_limit,                     # generation-aware
        ),
    )(seed_arr, *inputs)

    return out, m_flat.reshape(B, S, F)


if __name__ == "__main__":
    # Small shapes consistent with the module: batch=16, input_size=16, num_selections=8.
    B, F, S = 16, 16, 8
    temperature, gamma = 10.0, 1.0 / 3.0

    key = jax.random.PRNGKey(0)
    kx, kl = jax.random.split(key)
    x = jax.random.normal(kx, (B, F), dtype=jnp.float32)
    # Module __init__ uses zeros(num_selections, input_size); use a small non-zero
    # parameter state here so the logits path is actually exercised.
    logits_param = 0.3 * jax.random.normal(kl, (S, F), dtype=jnp.float32)

    out, M = concrete_selector_forward(
        x, logits_param, seed=0, temperature=temperature, gamma=gamma
    )
    jax.block_until_ready((out, M))

    # --- structural / consistency validation (RNG stream differs from torch by design) ---
    assert out.shape == (B, S) and M.shape == (B, S, F)
    assert not bool(jnp.any(jnp.isnan(out))) and not bool(jnp.any(jnp.isnan(M)))
    assert bool(jnp.all(M >= 0.0)) and bool(jnp.all(M <= 1.0))
    # Rows of M are softmaxes (exact normalization) -> sum to 1.
    assert jnp.allclose(jnp.sum(M, axis=-1), 1.0, atol=1e-5)
    # out must be consistent with applying the returned selection matrix to x.
    out_chk = jnp.einsum("bsf,bf->bs", M, x)
    assert jnp.allclose(out, out_chk, atol=1e-5, rtol=1e-5)
    # Noise must vary across rows and across batch tiles.
    assert not bool(jnp.allclose(M[0, 0], M[0, 1]))
    assert not bool(jnp.allclose(M[0], M[-1]))

    # When the uniforms come from the wrapper (non-TPU fallback path) the kernel must
    # match a plain-JAX reference of the original torch math on the same uniforms.
    if jax.default_backend() != "tpu":
        eps = jnp.finfo(jnp.float32).eps
        u = jax.random.uniform(jax.random.PRNGKey(0), (B, S * F), dtype=jnp.float32)
        u = jnp.clip(u, eps, 1.0 - eps)
        g = (-jnp.log(-jnp.log(u))).reshape(B, S, F)
        scores = (logits_param / gamma + g) / temperature
        M_ref = jax.nn.softmax(scores, axis=-1)
        assert jnp.allclose(M, M_ref, atol=1e-5, rtol=1e-5)
        assert jnp.allclose(out, jnp.einsum("bsf,bf->bs", M_ref, x), atol=1e-5, rtol=1e-5)

    print("KERNEL_OK")
</pallas_src>

<mosaic_0001>
module attributes {stable_mosaic.version = 11 : i64} {
  func.func @_selector_kernel(%arg0: i32, %arg1: memref<1xi32, #tpu.memory_space<smem>>, %arg2: memref<1x128xf32, #tpu.memory_space<vmem>>, %arg3: memref<128x8xf32, #tpu.memory_space<vmem>>, %arg4: memref<8x128xf32, #tpu.memory_space<vmem>>, %arg5: memref<16x128xf32, #tpu.memory_space<vmem>>, %arg6: memref<8x16xf32, #tpu.memory_space<vmem>>, %arg7: memref<8x128xf32, #tpu.memory_space<vmem>>, %arg8: memref<8x8xf32, #tpu.memory_space<vmem>>, %arg9: memref<8x128xf32, #tpu.memory_space<vmem>>) attributes {dimension_semantics = [#tpu.dimension_semantics<parallel>], iteration_bounds = array<i64: 2>, scalar_prefetch = 1 : i64, scratch_operands = 0 : i64, tpu.core_type = #tpu.core_type<tc>, window_params = [{pipeline_mode = #tpu.pipeline_mode<synchronous>, transform_indices = @transform_0, window_bounds = array<i64: 1, 128>}, {pipeline_mode = #tpu.pipeline_mode<synchronous>, transform_indices = @transform_1, window_bounds = array<i64: 128, 8>}, {pipeline_mode = #tpu.pipeline_mode<synchronous>, transform_indices = @transform_2, window_bounds = array<i64: 8, 128>}, {pipeline_mode = #tpu.pipeline_mode<synchronous>, transform_indices = @transform_3, window_bounds = array<i64: 16, 128>}, {transform_indices = @transform_4, window_bounds = array<i64: 8, 16>}, {transform_indices = @transform_5, window_bounds = array<i64: 8, 128>}, {transform_indices = @transform_6, window_bounds = array<i64: 8, 8>}, {transform_indices = @transform_7, window_bounds = array<i64: 8, 128>}]} {
    %c0 = arith.constant 0 : index
    %c0_0 = arith.constant 0 : index
    %0 = vector.load %arg7[%c0, %c0_0] : memref<8x128xf32, #tpu.memory_space<vmem>>, vector<8x128xf32>
    %cst = arith.constant 1.1920929E-7 : f32
    %cst_1 = arith.constant 0.99999988 : f32
    %1 = vector.broadcast %cst : f32 to vector<8x128xf32>
    %2 = arith.maximumf %1, %0 : vector<8x128xf32>
    %3 = vector.broadcast %cst_1 : f32 to vector<8x128xf32>
    %4 = arith.minimumf %3, %2 : vector<8x128xf32>
    %5 = math.log %4 : vector<8x128xf32>
    %cst_2 = arith.constant 0.000000e+00 : f32
    %6 = vector.broadcast %cst_2 : f32 to vector<8x128xf32>
    %7 = arith.subf %6, %5 : vector<8x128xf32>
    %8 = math.log %7 : vector<8x128xf32>
    %cst_3 = arith.constant 0.000000e+00 : f32
    %9 = vector.broadcast %cst_3 : f32 to vector<8x128xf32>
    %10 = arith.subf %9, %8 : vector<8x128xf32>
    %c0_4 = arith.constant 0 : index
    %c0_5 = arith.constant 0 : index
    %11 = vector.load %arg2[%c0_4, %c0_5] : memref<1x128xf32, #tpu.memory_space<vmem>>, vector<1x128xf32>
    %cst_6 = arith.constant 1.000000e-01 : f32
    %12 = vector.broadcast %cst_6 : f32 to vector<8x128xf32>
    %13 = arith.mulf %10, %12 : vector<8x128xf32>
    %14 = vector.broadcast %11 : vector<1x128xf32> to vector<8x128xf32>
    %15 = arith.addf %14, %13 : vector<8x128xf32>
    %16 = math.exp %15 : vector<8x128xf32>
    %c0_7 = arith.constant 0 : index
    %c0_8 = arith.constant 0 : index
    %17 = vector.load %arg3[%c0_7, %c0_8] : memref<128x8xf32, #tpu.memory_space<vmem>>, vector<128x8xf32>
    %cst_9 = arith.constant dense<0.000000e+00> : vector<8x8xf32>
    %18 = tpu.matmul %16, %17, %cst_9 {dimension_numbers = #tpu.dot_dimension_numbers<[1], [0], [0], [1], [0, 0, 1, 1], [], []>} : vector<8x128xf32>, vector<128x8xf32>, vector<8x8xf32> -> vector<8x8xf32>
    %c0_10 = arith.constant 0 : index
    %c0_11 = arith.constant 0 : index
    %19 = vector.load %arg6[%c0_10, %c0_11] : memref<8x16xf32, #tpu.memory_space<vmem>>, vector<8x16xf32>
    %c0_12 = arith.constant 0 : index
    %c0_13 = arith.constant 0 : index
    %20 = vector.load %arg5[%c0_12, %c0_13] : memref<16x128xf32, #tpu.memory_space<vmem>>, vector<16x128xf32>
    %cst_14 = arith.constant dense<0.000000e+00> : vector<8x128xf32>
    %21 = tpu.matmul %19, %20, %cst_14 {dimension_numbers = #tpu.dot_dimension_numbers<[1], [0], [0], [1], [0, 0, 1, 1], [], []>} : vector<8x16xf32>, vector<16x128xf32>, vector<8x128xf32> -> vector<8x128xf32>
    %22 = arith.mulf %16, %21 : vector<8x128xf32>
    %c0_15 = arith.constant 0 : index
    %c0_16 = arith.constant 0 : index
    %23 = vector.load %arg3[%c0_15, %c0_16] : memref<128x8xf32, #tpu.memory_space<vmem>>, vector<128x8xf32>
    %cst_17 = arith.constant dense<0.000000e+00> : vector<8x8xf32>
    %24 = tpu.matmul %22, %23, %cst_17 {dimension_numbers = #tpu.dot_dimension_numbers<[1], [0], [0], [1], [0, 0, 1, 1], [], []>} : vector<8x128xf32>, vector<128x8xf32>, vector<8x8xf32> -> vector<8x8xf32>
    %cst_18 = arith.constant 1.000000e+00 : f32
    %25 = vector.broadcast %cst_18 : f32 to vector<8x8xf32>
    %26 = arith.divf %25, %18 : vector<8x8xf32>
    %27 = arith.mulf %24, %26 : vector<8x8xf32>
    %c0_19 = arith.constant 0 : index
    %c0_20 = arith.constant 0 : index
    %28 = vector.load %arg8[%c0_19, %c0_20] : memref<8x8xf32, #tpu.memory_space<vmem>>, vector<8x8xf32>
    tpu.vector_store %arg8[%c0_19, %c0_20], %27 {strides = array<i32>} : memref<8x8xf32, #tpu.memory_space<vmem>>, vector<8x8xf32>,
    %c0_21 = arith.constant 0 : index
    %c0_22 = arith.constant 0 : index
    %29 = vector.load %arg4[%c0_21, %c0_22] : memref<8x128xf32, #tpu.memory_space<vmem>>, vector<8x128xf32>
    %cst_23 = arith.constant dense<0.000000e+00> : vector<8x128xf32>
    %30 = tpu.matmul %26, %29, %cst_23 {dimension_numbers = #tpu.dot_dimension_numbers<[1], [0], [0], [1], [0, 0, 1, 1], [], []>} : vector<8x8xf32>, vector<8x128xf32>, vector<8x128xf32> -> vector<8x128xf32>
    %31 = arith.mulf %16, %30 : vector<8x128xf32>
    %c0_24 = arith.constant 0 : index
    %c0_25 = arith.constant 0 : index
    %32 = vector.load %arg9[%c0_24, %c0_25] : memref<8x128xf32, #tpu.memory_space<vmem>>, vector<8x128xf32>
    tpu.vector_store %arg9[%c0_24, %c0_25], %31 {strides = array<i32>} : memref<8x128xf32, #tpu.memory_space<vmem>>, vector<8x128xf32>,
    return
  }
  func.func @transform_0(%arg0: i32, %arg1: memref<1xi32, #tpu.memory_space<smem>>) -> (i32, i32) {
    %c0_i32 = arith.constant 0 : i32
    %c0_i32_0 = arith.constant 0 : i32
    %c0_i32_1 = arith.constant 0 : i32
    return %c0_i32, %c0_i32_0 : i32, i32
  }
  func.func @transform_1(%arg0: i32, %arg1: memref<1xi32, #tpu.memory_space<smem>>) -> (i32, i32) {
    %c0_i32 = arith.constant 0 : i32
    %c0_i32_0 = arith.constant 0 : i32
    %c0_i32_1 = arith.constant 0 : i32
    return %c0_i32, %c0_i32_0 : i32, i32
  }
  func.func @transform_2(%arg0: i32, %arg1: memref<1xi32, #tpu.memory_space<smem>>) -> (i32, i32) {
    %c0_i32 = arith.constant 0 : i32
    %c0_i32_0 = arith.constant 0 : i32
    %c0_i32_1 = arith.constant 0 : i32
    return %c0_i32, %c0_i32_0 : i32, i32
  }
  func.func @transform_3(%arg0: i32, %arg1: memref<1xi32, #tpu.memory_space<smem>>) -> (i32, i32) {
    %c0_i32 = arith.constant 0 : i32
    %c0_i32_0 = arith.constant 0 : i32
    %c0_i32_1 = arith.constant 0 : i32
    return %c0_i32, %c0_i32_0 : i32, i32
  }
  func.func @transform_4(%arg0: i32, %arg1: memref<1xi32, #tpu.memory_space<smem>>) -> (i32, i32) {
    %c0_i32 = arith.constant 0 : i32
    %c0_i32_0 = arith.constant 0 : i32
    return %arg0, %c0_i32 : i32, i32
  }
  func.func @transform_5(%arg0: i32, %arg1: memref<1xi32, #tpu.memory_space<smem>>) -> (i32, i32) {
    %c0_i32 = arith.constant 0 : i32
    %c0_i32_0 = arith.constant 0 : i32
    return %arg0, %c0_i32 : i32, i32
  }
  func.func @transform_6(%arg0: i32, %arg1: memref<1xi32, #tpu.memory_space<smem>>) -> (i32, i32) {
    %c0_i32 = arith.constant 0 : i32
    %c0_i32_0 = arith.constant 0 : i32
    return %arg0, %c0_i32 : i32, i32
  }
  func.func @transform_7(%arg0: i32, %arg1: memref<1xi32, #tpu.memory_space<smem>>) -> (i32, i32) {
    %c0_i32 = arith.constant 0 : i32
    %c0_i32_0 = arith.constant 0 : i32
    return %arg0, %c0_i32 : i32, i32
  }
}

</mosaic_0001>

<bundles_post_ra>
// kernel: tpu_custom_call.1
= control target key start
LH: loop header
LB: loop body
LE: loop exit
PB: predicated region body
PF: predicated region fallthrough
CT: control target
= control target key end

     0   :  { %15 = vsyncpa [#allocation5], 0  ;;  %s1302_s0 = inlined_call_operand.<no memory space> [shape: s32[1], index: 0, kind: input, shape index: {}]   ;;  %s1303_s1 = inlined_call_operand.vmem [shape: f32[1,128], index: 1, kind: input, shape index: {}]   ;;  %s1304_s2 = inlined_call_operand.vmem [shape: f32[128,8], index: 2, kind: input, shape index: {}]   ;;  %s1305_s3 = inlined_call_operand.vmem [shape: f32[8,128], index: 3, kind: input, shape index: {}]   ;;  %s1306_s4 = inlined_call_operand.vmem [shape: f32[16,128], index: 4, kind: input, shape index: {}]   ;;  %s1307_s5 = inlined_call_operand.vmem [shape: f32[16,16], index: 5, kind: input, shape index: {}]   ;;  %s1308_s6 = inlined_call_operand.vmem [shape: f32[16,128], index: 6, kind: input, shape index: {}]   ;;  %s1309_s7 = inlined_call_operand.vmem [shape: f32[16,8], index: 7, kind: output, shape index: {0}]   ;;  %s1310_s8 = inlined_call_operand.hbm [shape: f32[16,128], index: 8, kind: output, shape index: {1}]  }
   0x1   :  { %17 = vsyncpa [#allocation5 + $0x1], 0  ;;  %s1105_s26 = smov 0   ;;  %s1107_s27 = smov 0  }
   0x2   :  { %s1109_s28 = smov 0   ;;  %s1111_s29 = smov 0  }
   0x3 LB: > { %s1126_s30 = sadd.s32 4294967295, %s1054_s29   ;;  %s755_s9 = sadd.s32 4294967294, %s1054_s29   ;;  %s1054_s29 = sphi %s1111_s29, %s1316_s29   ;;  %s1050_s28 = sphi %s1109_s28, %s1315_s28   ;;  %s1046_s27 = sphi %s1107_s27, %s1314_s27   ;;  %s1042_s26 = sphi %s1105_s26, %s1313_s26  }
   0x4   : > { %s1130_s10 = sadd.s32 1, %s1054_s29   ;;  %s192_s11 = sadd.s32 1, %s1050_s28 }
   0x5   : > { %s189_s12 = ssub.s32 %s1054_s29, %s1130_s10  ;;  %p202_p0 = scmp.ne.s32.totalorder %s1050_s28, %s1046_s27 }
   0x6   : > { %p190_p1 = scmp.eq.s32.totalorder %s189_s12, 0  ;;  %p203_p2 = scmp.eq.s32.totalorder %s1126_s30, 1 }
   0x7   : > { %p208_p3 = scmp.ne.s32.totalorder %s1046_s27, %s1042_s26  ;;  %p209_p4 = scmp.eq.s32.totalorder %s755_s9, 1 }
   0x8   : > { %s1141_s13 = scalar_select %p190_p1, %s1050_s28, %s192_s11  }
   0x9   : > { %p1143_p5 = por %p203_p2, %p202_p0  ;;  %p1147_p6 = por %p209_p4, %p208_p3 }
   0xa   : > { %p758_p7 = scmp.ge.s32.totalorder %s1054_s29, 1  ;;  %p253_p8 = scmp.lt.s32.totalorder %s1054_s29, 3 }
   0xc   : > { %p254_p9 = pnand %p758_p7, %p253_p8 }
   0xd   : > { %v411_v0 = vld [vmem:[%s1306_s4] sm:$0xff] (!%p254_p9)  ;;  %v412_v1 = vld [vmem:[%s1306_s4 + $0x8] sm:$0xff] (!%p254_p9)  ;;  %p292_p10 = scmp.lt.s32.totalorder (!%p254_p9), %s1126_s30, 1  ;;  %v1056_v2 = vmov (!%p254_p9), 0.0|0.0   ;;  %vm1057_vm0 = vmmov (!%p254_p9), 0   ;;  %v1058_v4 = vmov (!%p254_p9), 0.0  }
   0xe   : > { %257 = sbr.rel (%p254_p9) target bundleno = 528 (0x210), region = 44  ;;  %915 = vmatprep.subr.bf16.mxu1 (!%p254_p9), %v1056_v2  ;;  %v916_v3 = vpack.c.bf16 (!%p254_p9), %v412_v1, %v411_v0  ;;  %848 = vmatprep.mubr.msk.f32.mxu1 (!%p254_p9), %vm1057_vm0, %v1058_v4  ;;  %v324_v5 = vld [vmem:[%s1304_s2] sm:$0xff] (!%p254_p9)  ;;  %v325_v6 = vld [vmem:[%s1304_s2 + $0x8] sm:$0xff] (!%p254_p9)  ;;  %v326_v8 = vld [vmem:[%s1304_s2 + $0x10] sm:$0xff] (!%p254_p9)  ;;  %vm413_vm1 = vcmask (!%p254_p9), 130048   ;;  %vm561_vm2 = vcmask (!%p254_p9), 64512  }
   0xf   : > { %891 = vmatprep.subr.bf16.mxu0 (!%p254_p9), %v1056_v2  ;;  %v892_v7 = vpack.c.bf16 (!%p254_p9), %v325_v6, %v324_v5  ;;  %v327_v9 = vld [vmem:[%s1304_s2 + $0x18] sm:$0xff] (!%p254_p9)  ;;  %841 = vmatprep.mubr.msk.f32.mxu0 (!%p254_p9), %vm1057_vm0, %v1058_v4  ;;  %v328_v11 = vld [vmem:[%s1304_s2 + $0x20] sm:$0xff] (!%p254_p9)  ;;  %v329_v12 = vld [vmem:[%s1304_s2 + $0x28] sm:$0xff] (!%p254_p9)  ;;  %s289_s9 = sand.u32 (!%p254_p9), 1, %s1046_s27   ;;  %s767_s16 = sshll.u32 (!%p254_p9), %s1126_s30, 7 }
  0x10   : > { %917 = vmatpush3.bf16.msra.mxu1 (!%p254_p9), %v916_v3  ;;  %v895_v10 = vpack.c.bf16 (!%p254_p9), %v327_v9, %v326_v8  ;;  %v898_v16 = vpack.c.bf16 (!%p254_p9), %v329_v12, %v328_v11  ;;  %v330_v18 = vld [vmem:[%s1304_s2 + $0x30] sm:$0xff] (!%p254_p9)  ;;  %v331_v19 = vld [vmem:[%s1304_s2 + $0x38] sm:$0xff] (!%p254_p9)  ;;  %v332_v21 = vld [vmem:[%s1304_s2 + $0x40] sm:$0xff] (!%p254_p9)  ;;  %s759_s11 = sshll.u32 (!%p254_p9), %s289_s9, 3 }
  0x11   : > { %893 = vmatpush3.bf16.msra.mxu0 (!%p254_p9), %v892_v7  ;;  %918 = vmatprep.subr.bf16.mxu1 (!%p254_p9), %v1056_v2  ;;  %v901_v20 = vpack.c.bf16 (!%p254_p9), %v331_v19, %v330_v18  ;;  %v333_v22 = vld [vmem:[%s1304_s2 + $0x48] sm:$0xff] (!%p254_p9)  ;;  %v334_v24 = vld [vmem:[%s1304_s2 + $0x50] sm:$0xff] (!%p254_p9)  ;;  %v335_v25 = vld [vmem:[%s1304_s2 + $0x58] sm:$0xff] (!%p254_p9)  ;;  %s291_s17 = scalar_lea.vmem (!%p254_p9), [#allocation4], %s759_s11 }
  0x12   : > { %894 = vmatprep.subr.bf16.mxu0 (!%p254_p9), %v1056_v2  ;;  %v904_v23 = vpack.c.bf16 (!%p254_p9), %v333_v22, %v332_v21  ;;  %v907_v26 = vpack.c.bf16 (!%p254_p9), %v335_v25, %v334_v24  ;;  %v336_v28 = vld [vmem:[%s1304_s2 + $0x60] sm:$0xff] (!%p254_p9)  ;;  %v337_v29 = vld [vmem:[%s1304_s2 + $0x68] sm:$0xff] (!%p254_p9)  ;;  %v338_v33 = vld [vmem:[%s1304_s2 + $0x70] sm:$0xff] (!%p254_p9) }
  0x13   : > { %v910_v32 = vpack.c.bf16 (!%p254_p9), %v337_v29, %v336_v28  ;;  %v339_v34 = vld [vmem:[%s1304_s2 + $0x78] sm:$0xff] (!%p254_p9)  ;;  %v763_v39 = vld [vmem:[%s1303_s1] ss:$0 sm:$0xff] (!%p254_p9) }
  0x14   : > { %v913_v35 = vpack.c.bf16 (!%p254_p9), %v339_v34, %v338_v33  ;;  %v563_v44 = vld [vmem:[%s1305_s3] sm:$0xff] (!%p254_p9) }
  0x15   : > { %s293_s0 = scalar_select %p292_p10, %s1126_s30, 1  ;;  %896 = vmatpush3.bf16.msra.mxu0 %v895_v10 }
  0x16   : > { %897 = vmatprep.subr.bf16.mxu0 %v1056_v2  ;;  %s1059_s30 = smov [#allocation4]  }
  0x17   : > { %s1179_s12 = sshll.u32 %s293_s0, 3  ;;  %s996_s23 = sshll.u32 %s1059_s30, 4  ;;  %s997_s23 = int_to_ptr.vmem [resolvable:$false] %s996_s23 }
  0x18   : > { %s295_s18 = scalar_lea.vmem %s1307_s5, %s1179_s12  ;;  %s299_s21 = scalar_lea.vmem %s1308_s6, %s1179_s12 }
  0x19   : > { %v304_v13 = vld [vmem:[%s299_s21] sm:$0xff]  ;;  %899 = vmatpush3.bf16.msra.mxu0 %v898_v16  ;;  %s303_s25 = scalar_lea.vmem %s1309_s7, %s1179_s12  ;;  %s1260_s21 = scalar_lea.hbm %s1310_s8, %s767_s16 }
  0x1a   : > { %v410_v14 = vld [vmem:[%s295_s18] sm:$0xff]  ;;  %v305_v15 = vmax.f32 %v304_v13, 1.1920929e-07  ;;  %900 = vmatprep.subr.bf16.mxu0 %v1056_v2  ;;  %s660_s18 = sshll.u32 %s291_s17, 4  ;;  %s644_s12 = scalar_lea.sflag [#allocation5], %s289_s9  ;;  %s1262_s18 = int_to_ptr.vmem [resolvable:$true] %s660_s18 }
  0x1b   : > { %849 = vmatmul.mubr.msk.f32.vlgmr.msra.gmra.mrb[0].mxu1 %vm413_vm1, %v410_v14  ;;  %s992_s22 = scalar_lea.vmem %s1262_s18, 128  ;;  %s998_s0 = scalar_lea.vmem %s997_s23, 256 }
  0x1c   : > { %920 = vmatpush3.bf16.msra.mxu1 %v892_v7  ;;  %v306_v17 = vmin.f32 %v305_v15, 0.9999999  ;;  %883 = vmatprep.mubr.msk.f32.mxu1 %vm1057_vm0, %v1058_v4  ;;  %p993_p11 = scmp.ne.s32.totalorder %s1262_s18, %s992_s22  ;;  %p999_p0 = scmp.lt.s32.totalorder %s1262_s18, %s997_s23 }
  0x1d   : > { %921 = vmatprep.subr.bf16.mxu1 %v1056_v2  ;;  %902 = vmatpush3.bf16.msra.mxu0 %v901_v20  ;;  %p1000_p1 = scmp.lt.s32.totalorder %s998_s0, %s992_s22 }
  0x1e   : > { %984 = vlog2.f32 %v306_v17  ;;  %903 = vmatprep.subr.bf16.mxu0 %v1056_v2  ;;  %p994_p12 = pnand %p993_p11, %p1143_p5 }
  0x1f   : > { %p1001_p2 = por %p1000_p1, %p999_p0 }
  0x20   : > { %923 = vmatpush3.bf16.msra.mxu1 %v895_v10  ;;  %p995_p13 = pneg %p994_p12 }
  0x21   : > { %924 = vmatprep.subr.bf16.mxu1 %v1056_v2  ;;  %905 = vmatpush3.bf16.msra.mxu0 %v904_v23 }
  0x22   : > { %906 = vmatprep.subr.bf16.mxu0 %v1056_v2  ;;  %p1002_p3 = pnand %p1001_p2, %p995_p13 }
  0x24   : > { %926 = vmatpush3.bf16.msra.mxu1 %v898_v16 }
  0x25   : > { %927 = vmatprep.subr.bf16.mxu1 %v1056_v2  ;;  %908 = vmatpush3.bf16.msra.mxu0 %v907_v26 }
  0x26   : > { %909 = vmatprep.subr.bf16.mxu0 %v1056_v2 }
  0x28   : > { %929 = vmatpush3.bf16.msra.mxu1 %v901_v20  ;;  %v985_v27 = vpop.eup %984 }
  0x29   : > { %930 = vmatprep.subr.bf16.mxu1 %v1056_v2  ;;  %v308_v30 = vmul.f32 0.6931472, %v985_v27  ;;  %911 = vmatpush3.bf16.msra.mxu0 %v910_v32 }
  0x2a   : > { %912 = vmatprep.subr.bf16.mxu0 %v1056_v2 }
  0x2b   : > { %v309_v31 = vsub.f32 0.0, %v308_v30 }
  0x2c   : > { %932 = vmatpush3.bf16.msra.mxu1 %v904_v23 }
  0x2d   : > { %933 = vmatprep.subr.bf16.mxu1 %v1056_v2  ;;  %986 = vlog2.f32 %v309_v31  ;;  %914 = vmatpush3.bf16.msra.mxu0 %v913_v35 }
  0x2e   : > { %886 = vmatprep.subr.mxu0 %v1058_v4 }
  0x30   : > { %935 = vmatpush3.bf16.msra.mxu1 %v907_v26 }
  0x31   : > { %936 = vmatprep.subr.bf16.mxu1 %v1056_v2 }
  0x34   : > { %938 = vmatpush3.bf16.msra.mxu1 %v910_v32 }
  0x35   : > { %939 = vmatprep.subr.bf16.mxu1 %v1056_v2 }
  0x37   : > { %v987_v36 = vpop.eup %986 }
  0x38   : > { %941 = vmatpush3.bf16.msra.mxu1 %v913_v35  ;;  %v311_v37 = vmul.f32 0.6931472, %v987_v36 }
  0x3a   : > { %v312_v38 = vsub.f32 0.0, %v311_v37 }
  0x3c   : > { %v314_v40 = vmul.f32 0.1, %v312_v38 }
  0x3e   : > { %v321_v41 = vadd.f32 %v763_v39, %v314_v40 }
  0x40   : > { %v322_v42 = vmul.f32 1.442695, %v321_v41 }
  0x42   : > { %988 = vpow2.f32 %v322_v42 }
  0x4c   : > { %v989_v43 = vpop.eup %988 }
  0x4d   : > { %842 = vmatmul.mubr.f32.vlgmr.msra.gmra.mrb[0].mxu0 %v989_v43 }
  0x4e   : > { %888 = vmatprep.mubr.msk.f32.mxu0 %vm1057_vm0, %v1058_v4  ;;  %887 = vmatpush3.msra.mxu0 %v563_v44 }
  0xee   : > { %v483_v45 = vpop.f32.mrb[0].mxu1 }
  0xef   : > { %v487_v46 = vmul.f32 %v989_v43, %v483_v45  ;;  %v850_v47 = vpop.f32.mrb[1].mxu1 }
  0xf1   : > { %884 = vmatmul.mubr.f32.vlgmr.msra.gmra.mrb[2].mxu1 %v487_v46 }
 0x120   : > { %v406_v48 = vpop.f32.mrb[0].mxu0 }
 0x121   : > { %990 = vrcp.f32 %v406_v48  ;;  %v843_v49 = vpop.f32.mrb[1].mxu0 }
 0x12b   : > { %v991_v50 = vpop.eup %990 }
 0x12c   : > { %889 = vmatmul.mubr.msk.f32.vlgmr.msra.gmra.mrb[2].mxu0 %vm561_vm2, %v991_v50 }
 0x1c4   : > { %v554_v51 = vpop.f32.mrb[2].mxu1 }
 0x1c5   : > { %v560_v52 = vmul.f32 %v991_v50, %v554_v51  ;;  %v885_v53 = vpop.f32.mrb[3].mxu1 }
 0x1c7   : > { %562 = vst.msk [vmem:[%s303_s25] sm:$0xff] %vm561_vm2, %v560_v52 }
 0x1ff   : > { %v633_v54 = vpop.f32.mrb[2].mxu0 }
 0x200   : > { %v637_v55 = vmul.f32 %v989_v43, %v633_v54  ;;  %v890_v56 = vpop.f32.mrb[3].mxu0 }
 0x202   : > { %638 = vst [vmem:[%s291_s17] sm:$0xff] %v637_v55 }
 0x203   : > { %1005 = shalt.err (!%p1002_p3)
}
 0x204   : > { %s1006_s24 = scalar_lea.hbm %s1260_s21, 128  ;;  %s1010_s11 = scalar_lea.hbm %s1310_s8, 256 }
 0x205   : > { %p1007_p4 = scmp.ne.s32.totalorder %s1260_s21, %s1006_s24  ;;  %p1011_p9 = scmp.lt.u32.totalorder %s1260_s21, %s1310_s8 }
 0x206   : > { %p1012_p10 = scmp.lt.u32.totalorder %s1010_s11, %s1006_s24  ;;  %p1014_p12 = scmp.lt.u32.totalorder %s1006_s24, %s1260_s21 }
 0x207   : > { %p1008_p7 = pnand %p1007_p4, %p1143_p5 }
 0x208   : > { %p1013_p11 = por %p1012_p10, %p1011_p9 }
 0x209   : > { %p1009_p8 = pneg %p1008_p7 }
 0x20a   : > { %p1015_p13 = por %p1014_p12, %p1013_p11 }
 0x20c   : > { %p1016_p0 = pnand %p1015_p13, %p1009_p8 }
 0x20e   : > { %1019 = shalt.err (!%p1016_p0)
}
 0x20f   : > { %942 = dma.vmem_to_hbm [thread:$0]  (%p1143_p5), %s1262_s18, 128, %s1260_s21, %s644_s12  }
 0x210 PF: > { %p948_p1 = scmp.ge.s32.totalorder %s1054_s29, 2  ;;  %s679_s19 = sand.u32 1, %s1042_s26  }
 0x211   : > { %s680_s20 = scalar_lea.sflag [#allocation5], %s679_s19 }
 0x212   : > { %p945_p2 = pnand %p948_p1, %p1147_p6 }
 0x214   : > { %1037 = dma.done.wait (!%p945_p2), %s680_s20, 128  }
 0x215   : > { %1039 = vsyncadd (!%p945_p2), %s680_s20, 4294967168  ;;  %p20_p3 = scmp.ge.s32.totalorder %s1130_s10, 4   ;;  %s1313_s26 = smov %s1046_s27 }
 0x216   : > { %s1314_s27 = smov %s1050_s28  ;;  %s1315_s28 = smov %s1141_s13 }
 0x217   : > { %s1316_s29 = smov %s1130_s10  ;;  %22 = sbr.rel (!%p20_p3) target bundleno = 3 (0x3), region = 94 }
 0x21e   :  { %685 = vsyncpa [#allocation5], 1 }
 0x21f   :  { %687 = vsyncpa [#allocation5 + $0x1], 1 }

</bundles_post_ra>
